<compile_context>
chip_gen: v6e
topology: v6e:2x2x1
jax: 0.10.0
libtpu: 0.0.40
codegen_flags: <defaults>
</compile_context>

<pallas_src>
import functools

import jax
import jax.numpy as jnp
from jax import lax
from jax.experimental import pallas as pl
from jax.experimental.pallas import tpu as pltpu

BN_EPS = 1e-5
# Below this input-channel count the 1x1 (pointwise) projection is done on the
# VPU as unrolled broadcast-FMAs; at/above it we use the MXU.
_PW_MXU_MIN_CIN = 8


def _pogadw_fused_kernel(x_ref, p_ref, o_ref, pool_scr, *, layer_cfgs, param_offs):
    """One batch element per grid step; activations stay in registers/VMEM.

    x_ref    : (1, C0, L0)            native channels-first input block
    p_ref    : (R, Wp)                packed parameter slab (all layers)
    o_ref    : (1, C_last, L_last)    channels-first output block
    pool_scr : (max_Lin, max_Cout)    shared VMEM scratch for adaptive max-pool
    """
    x = x_ref[0].astype(jnp.float32)                    # (C0, L0)
    cur = jnp.transpose(x, (1, 0))                      # (L0, C0) channels-last

    for li, (kd, l_in, l_out, c_in, c_out, apply_act) in enumerate(layer_cfgs):
        dw_off, pw_off, b_off = param_offs[li]
        pad_l = (kd - 1) // 2

        # Depthwise conv ('same' padding, groups = C_in) via sublane rotations
        # plus a one-compare boundary mask per tap (lane-invariant (L,1) column).
        # TODO(synk): kernels_per_layer != 1 is not implemented.
        pos = lax.broadcasted_iota(jnp.int32, (l_in, 1), 0)
        acc = None
        for kk in range(kd):
            d = kk - pad_l
            w_row = p_ref[pl.ds(dw_off + kk, 1), 0:c_in]           # (1, C_in)
            if d == 0:
                tap = cur
            elif d > 0:
                tap = jnp.where(pos < l_in - d,
                                pltpu.roll(cur, shift=l_in - d, axis=0), 0.0)
            else:
                tap = jnp.where(pos >= -d,
                                pltpu.roll(cur, shift=-d, axis=0), 0.0)
            term = tap * w_row
            acc = term if acc is None else acc + term

        # Pointwise 1x1 conv; BN (eval) and both conv biases are pre-folded
        # wrapper-side into (W', b') stored in the packed slab.
        bias = p_ref[pl.ds(b_off, 1), 0:c_out]                     # (1, C_out)
        if c_in < _PW_MXU_MIN_CIN:
            y = acc[:, 0:1] * p_ref[pl.ds(pw_off, 1), 0:c_out]
            for c in range(1, c_in):
                y = y + acc[:, c:c + 1] * p_ref[pl.ds(pw_off + c, 1), 0:c_out]
            y = y + bias
        else:
            w_pw = p_ref[pl.ds(pw_off, c_in), 0:c_out]             # (C_in, C_out)
            y = jnp.dot(acc, w_pw, preferred_element_type=jnp.float32) + bias

        if apply_act:                                   # ReLU skipped on last layer
            y = jnp.maximum(y, 0.0)

        # Dropout: identity in eval mode.

        # AdaptiveMaxPool1d (L_in % L_out == 0): windowed max via sublane-strided
        # reads of the shared VMEM scratch (full lane width, then a register
        # lane-slice, matching the previously verified strided-read pattern).
        # TODO(synk): L_in % L_out != 0 needs variable-size windows (unimplemented).
        # TODO(synk): a register-only strided-slice pooling path (no scratch
        # round-trip) was not adopted pending MLIR relayout verification.
        win = l_in // l_out
        if win == 1:
            cur = y
        else:
            pool_scr[0:l_in, 0:c_out] = y
            pooled = pool_scr[pl.ds(0, l_out, stride=win), :]
            for w in range(1, win):
                pooled = jnp.maximum(
                    pooled, pool_scr[pl.ds(w, l_out, stride=win), :])
            cur = pooled[:, 0:c_out]                               # (L_out, C_out)

    # channels-last -> PyTorch channels-first output block.
    # TODO(synk): a lane-dense (1, C_out*L_out) flattened store would avoid the
    # masked vst on L_out/128 lanes but needs a sublane->lane merge relayout.
    o_ref[0] = jnp.transpose(cur, (1, 0)).astype(o_ref.dtype)


def _fold_layer(p):
    """Fold BatchNorm (eval) and both conv biases into the pointwise weights."""
    s = p["gamma"] * lax.rsqrt(p["var"] + BN_EPS)                  # (1, C_out)
    wpp = p["pw_w"] * s                                            # (C_in, C_out)
    bpp = jnp.dot(p["dw_b"], wpp) + (p["pw_b"] - p["mean"]) * s + p["beta"]
    return p["dw_w"], wpp, bpp


def pogadw_forward(x_ncl, layer_params, feature_size):
    """PoGaDW forward (inference). Input/output are PyTorch-style (N, C, L)."""
    n, c0, l0 = x_ncl.shape
    n_layers = len(layer_params)
    assert n_layers == len(feature_size) and n_layers >= 1

    folded = [_fold_layer(p) for p in layer_params]

    # Static per-layer configs.
    layer_cfgs = []
    l_in, c_in = l0, c0
    for idx, ((dw_w, wpp, _b), l_out) in enumerate(zip(folded, feature_size)):
        kd = dw_w.shape[0]
        c_out = wpp.shape[1]
        assert l_in % l_out == 0, "kernel implements only L_in % L_out == 0"
        layer_cfgs.append((kd, l_in, l_out, c_in, c_out, idx != n_layers - 1))
        l_in, c_in = l_out, c_out
    l_last, c_last = l_in, c_in

    # Pack all per-layer params into one (rows, width) slab: per layer the rows
    # are [dw_w (K,C_in); W' (C_in,C_out); b' (1,C_out)], zero-padded to a
    # common lane width -> one parameter DMA, fetched once (constant index_map).
    width = max(max(cfg[3], cfg[4]) for cfg in layer_cfgs)
    pieces, param_offs, r = [], [], 0
    for (dw_w, wpp, bpp), cfg in zip(folded, layer_cfgs):
        kd, _, _, ci, co, _ = cfg
        param_offs.append((r, r + kd, r + kd + ci))
        for a in (dw_w, wpp, bpp):
            pieces.append(jnp.pad(a, ((0, 0), (0, width - a.shape[1]))))
        r += kd + ci + 1
    pslab = jnp.concatenate(pieces, axis=0).astype(jnp.float32)    # (r, width)

    # One shared pooling scratch sized to the largest pooled layer.
    pooled_cfgs = [cfg for cfg in layer_cfgs if cfg[1] // cfg[2] > 1]
    scr_rows = max([cfg[1] for cfg in pooled_cfgs], default=8)
    scr_cols = max([cfg[4] for cfg in pooled_cfgs], default=128)

    kernel = functools.partial(_pogadw_fused_kernel,
                               layer_cfgs=tuple(layer_cfgs),
                               param_offs=tuple(param_offs))

    return pl.pallas_call(
        kernel,
        out_shape=jax.ShapeDtypeStruct((n, c_last, l_last), jnp.float32),
        grid=(n,),
        in_specs=[
            pl.BlockSpec((1, c0, l0), lambda b: (b, 0, 0)),   # per-batch input tile
            pl.BlockSpec(pslab.shape, lambda b: (0, 0)),      # params: single DMA
        ],
        out_specs=pl.BlockSpec((1, c_last, l_last), lambda b: (b, 0, 0)),
        scratch_shapes=[pltpu.VMEM((scr_rows, scr_cols), jnp.float32)],
        compiler_params=pltpu.CompilerParams(
            # Batch steps are independent -> the two v7x TensorCores split the
            # batch; no effect on single-TC v5e/v6e.
            dimension_semantics=("parallel",),
            # Explicit scoped-VMEM budget (v7x: 64 MiB physical / 32 MiB default);
            # footprint here is <1 MiB so one value is safe on all generations.
            vmem_limit_bytes=32 * 1024 * 1024,
        ),
    )(x_ncl, pslab)


def init_pogadw_params(key, in_channels, out_channels, kernel_depth=3):
    """Deterministic synthetic parameters, shapes per DWSConv1D + BatchNorm1d."""
    params = []
    c_prev = in_channels
    for c_out in out_channels:
        key, k1, k2, k3, k4, k5, k6, k7, k8 = jax.random.split(key, 9)
        params.append(dict(
            # depthwise Conv1d(c_prev, c_prev*1, K, groups=c_prev): weight (c_prev,1,K)
            # stored here as (K, c_prev) for the channels-last kernel.
            dw_w=0.2 * jax.random.normal(k1, (kernel_depth, c_prev), jnp.float32),
            dw_b=0.1 * jax.random.normal(k2, (1, c_prev), jnp.float32),
            # pointwise Conv1d(c_prev, c_out, 1): weight (c_out, c_prev, 1)
            # stored as (c_prev, c_out).
            pw_w=0.2 * jax.random.normal(k3, (c_prev, c_out), jnp.float32),
            pw_b=0.1 * jax.random.normal(k4, (1, c_out), jnp.float32),
            gamma=1.0 + 0.1 * jax.random.normal(k5, (1, c_out), jnp.float32),
            beta=0.1 * jax.random.normal(k6, (1, c_out), jnp.float32),
            mean=0.1 * jax.random.normal(k7, (1, c_out), jnp.float32),
            var=jnp.abs(1.0 + 0.1 * jax.random.normal(k8, (1, c_out), jnp.float32)),
        ))
        c_prev = c_out
    return params


def reference_forward(x_ncl, layer_params, feature_size):
    """Pure-JAX reference (lax.conv) mirroring the PyTorch module in eval mode."""
    x = x_ncl
    n_layers = len(layer_params)
    for idx, (p, l_out) in enumerate(zip(layer_params, feature_size)):
        kd, c_in = p["dw_w"].shape
        pad_l = (kd - 1) // 2
        w_dw = jnp.transpose(p["dw_w"], (1, 0))[:, None, :]        # (c_in,1,K)
        x = lax.conv_general_dilated(
            x, w_dw, window_strides=(1,), padding=[(pad_l, kd - 1 - pad_l)],
            dimension_numbers=("NCH", "OIH", "NCH"), feature_group_count=c_in)
        x = x + p["dw_b"][0][None, :, None]
        w_pw = jnp.transpose(p["pw_w"], (1, 0))[:, :, None]        # (c_out,c_in,1)
        x = lax.conv_general_dilated(
            x, w_pw, window_strides=(1,), padding=[(0, 0)],
            dimension_numbers=("NCH", "OIH", "NCH"))
        x = x + p["pw_b"][0][None, :, None]
        inv = lax.rsqrt(p["var"][0] + BN_EPS)
        x = ((x - p["mean"][0][None, :, None])
             * (inv * p["gamma"][0])[None, :, None]
             + p["beta"][0][None, :, None])
        if idx != n_layers - 1:
            x = jnp.maximum(x, 0.0)
        n, c, seq_len = x.shape
        win = seq_len // l_out
        x = jnp.max(x.reshape(n, c, l_out, win), axis=-1)
    return x


if __name__ == "__main__":
    key = jax.random.PRNGKey(0)
    kx, kp_a, kp_b = jax.random.split(key, 3)

    N, C_IN, L = 2, 4, 64
    x = jax.random.normal(kx, (N, C_IN, L), jnp.float32)

    # Config A: module defaults (out_channels=[20], feature_size=[32]).
    OUT_CHANNELS_A, FEATURE_SIZE_A = [20], [32]
    params_a = init_pogadw_params(kp_a, C_IN, OUT_CHANNELS_A, kernel_depth=3)
    fwd_a = jax.jit(functools.partial(pogadw_forward, feature_size=FEATURE_SIZE_A))
    out_a = jax.block_until_ready(fwd_a(x, params_a))
    ref_a = reference_forward(x, params_a, FEATURE_SIZE_A)
    assert out_a.shape == (N, OUT_CHANNELS_A[-1], FEATURE_SIZE_A[-1]), out_a.shape
    assert jnp.allclose(out_a, ref_a, atol=1e-4, rtol=1e-4), \
        float(jnp.max(jnp.abs(out_a - ref_a)))

    # Config B: two layers fused in one pallas_call (exercises the ReLU path,
    # the MXU pointwise path for C_in >= 8, and in-VMEM layer fusion).
    OUT_CHANNELS_B, FEATURE_SIZE_B = [40, 24], [32, 16]
    params_b = init_pogadw_params(kp_b, C_IN, OUT_CHANNELS_B, kernel_depth=3)
    fwd_b = jax.jit(functools.partial(pogadw_forward, feature_size=FEATURE_SIZE_B))
    out_b = jax.block_until_ready(fwd_b(x, params_b))
    ref_b = reference_forward(x, params_b, FEATURE_SIZE_B)
    assert out_b.shape == (N, OUT_CHANNELS_B[-1], FEATURE_SIZE_B[-1]), out_b.shape
    assert jnp.allclose(out_b, ref_b, atol=1e-4, rtol=1e-4), \
        float(jnp.max(jnp.abs(out_b - ref_b)))

    print("KERNEL_OK")
</pallas_src>

<mosaic_0001>
module attributes {stable_mosaic.version = 11 : i64} {
  func.func @_pogadw_fused_kernel(%arg0: i32, %arg1: memref<1x4x64xf32, #tpu.memory_space<vmem>>, %arg2: memref<8x20xf32, #tpu.memory_space<vmem>>, %arg3: memref<1x20x32xf32, #tpu.memory_space<vmem>>, %arg4: memref<64x20xf32, #tpu.memory_space<vmem>>) attributes {dimension_semantics = [#tpu.dimension_semantics<parallel>], iteration_bounds = array<i64: 2>, scalar_prefetch = 0 : i64, scratch_operands = 1 : i64, tpu.core_type = #tpu.core_type<tc>, window_params = [{transform_indices = @transform_0, window_bounds = array<i64: 1, 4, 64>}, {pipeline_mode = #tpu.pipeline_mode<synchronous>, transform_indices = @transform_1, window_bounds = array<i64: 8, 20>}, {transform_indices = @transform_2, window_bounds = array<i64: 1, 20, 32>}]} {
    %c0 = arith.constant 0 : index
    %c0_0 = arith.constant 0 : index
    %c0_1 = arith.constant 0 : index
    %0 = vector.load %arg1[%c0, %c0_0, %c0_1] : memref<1x4x64xf32, #tpu.memory_space<vmem>>, vector<1x4x64xf32>
    %1 = vector.shape_cast %0 : vector<1x4x64xf32> to vector<4x64xf32>
    %2 = tpu.transpose %1, [1, 0] : vector<4x64xf32> -> vector<64x4xf32>
    %3 = tpu.iota {dimensions = array<i32: 0>} : vector<64x1xi32>
    %c0_2 = arith.constant 0 : index
    %c0_3 = arith.constant 0 : index
    %4 = vector.load %arg2[%c0_2, %c0_3] : memref<8x20xf32, #tpu.memory_space<vmem>>, vector<1x4xf32>
    %c1_i32 = arith.constant 1 : i32
    %5 = vector.broadcast %c1_i32 : i32 to vector<64x1xi32>
    %6 = arith.cmpi sge, %3, %5 : vector<64x1xi32>
    %c1_i32_4 = arith.constant 1 : i32
    %7 = tpu.dynamic_rotate %2 by %c1_i32_4 dim 0 : vector<64x4xf32>, i32 -> vector<64x4xf32>
    %cst = arith.constant 0.000000e+00 : f32
    %8 = vector.shape_cast %6 : vector<64x1xi1> to vector<64x1xi1>
    %9 = vector.broadcast %8 : vector<64x1xi1> to vector<64x4xi1>
    %10 = vector.broadcast %cst : f32 to vector<64x4xf32>
    %11 = arith.select %9, %7, %10 : vector<64x4xi1>, vector<64x4xf32>
    %12 = vector.broadcast %4 : vector<1x4xf32> to vector<64x4xf32>
    %13 = arith.mulf %11, %12 : vector<64x4xf32>
    %c1 = arith.constant 1 : index
    %c0_5 = arith.constant 0 : index
    %14 = vector.load %arg2[%c1, %c0_5] : memref<8x20xf32, #tpu.memory_space<vmem>>, vector<1x4xf32>
    %15 = vector.broadcast %14 : vector<1x4xf32> to vector<64x4xf32>
    %16 = arith.mulf %2, %15 : vector<64x4xf32>
    %17 = arith.addf %13, %16 : vector<64x4xf32>
    %c2 = arith.constant 2 : index
    %c0_6 = arith.constant 0 : index
    %18 = vector.load %arg2[%c2, %c0_6] : memref<8x20xf32, #tpu.memory_space<vmem>>, vector<1x4xf32>
    %c63_i32 = arith.constant 63 : i32
    %19 = vector.broadcast %c63_i32 : i32 to vector<64x1xi32>
    %20 = arith.cmpi slt, %3, %19 : vector<64x1xi32>
    %c63_i32_7 = arith.constant 63 : i32
    %21 = tpu.dynamic_rotate %2 by %c63_i32_7 dim 0 : vector<64x4xf32>, i32 -> vector<64x4xf32>
    %cst_8 = arith.constant 0.000000e+00 : f32
    %22 = vector.shape_cast %20 : vector<64x1xi1> to vector<64x1xi1>
    %23 = vector.broadcast %22 : vector<64x1xi1> to vector<64x4xi1>
    %24 = vector.broadcast %cst_8 : f32 to vector<64x4xf32>
    %25 = arith.select %23, %21, %24 : vector<64x4xi1>, vector<64x4xf32>
    %26 = vector.broadcast %18 : vector<1x4xf32> to vector<64x4xf32>
    %27 = arith.mulf %25, %26 : vector<64x4xf32>
    %28 = arith.addf %17, %27 : vector<64x4xf32>
    %c7 = arith.constant 7 : index
    %c0_9 = arith.constant 0 : index
    %29 = vector.load %arg2[%c7, %c0_9] : memref<8x20xf32, #tpu.memory_space<vmem>>, vector<1x20xf32>
    %30 = vector.extract_strided_slice %28 {offsets = [0, 0], sizes = [64, 1], strides = [1, 1]} : vector<64x4xf32> to vector<64x1xf32>
    %c3 = arith.constant 3 : index
    %c0_10 = arith.constant 0 : index
    %31 = vector.load %arg2[%c3, %c0_10] : memref<8x20xf32, #tpu.memory_space<vmem>>, vector<1x20xf32>
    %32 = vector.broadcast %30 : vector<64x1xf32> to vector<64x20xf32>
    %33 = vector.broadcast %31 : vector<1x20xf32> to vector<64x20xf32>
    %34 = arith.mulf %32, %33 : vector<64x20xf32>
    %35 = vector.extract_strided_slice %28 {offsets = [0, 1], sizes = [64, 1], strides = [1, 1]} : vector<64x4xf32> to vector<64x1xf32>
    %c4 = arith.constant 4 : index
    %c0_11 = arith.constant 0 : index
    %36 = vector.load %arg2[%c4, %c0_11] : memref<8x20xf32, #tpu.memory_space<vmem>>, vector<1x20xf32>
    %37 = vector.broadcast %35 : vector<64x1xf32> to vector<64x20xf32>
    %38 = vector.broadcast %36 : vector<1x20xf32> to vector<64x20xf32>
    %39 = arith.mulf %37, %38 : vector<64x20xf32>
    %40 = arith.addf %34, %39 : vector<64x20xf32>
    %41 = vector.extract_strided_slice %28 {offsets = [0, 2], sizes = [64, 1], strides = [1, 1]} : vector<64x4xf32> to vector<64x1xf32>
    %c5 = arith.constant 5 : index
    %c0_12 = arith.constant 0 : index
    %42 = vector.load %arg2[%c5, %c0_12] : memref<8x20xf32, #tpu.memory_space<vmem>>, vector<1x20xf32>
    %43 = vector.broadcast %41 : vector<64x1xf32> to vector<64x20xf32>
    %44 = vector.broadcast %42 : vector<1x20xf32> to vector<64x20xf32>
    %45 = arith.mulf %43, %44 : vector<64x20xf32>
    %46 = arith.addf %40, %45 : vector<64x20xf32>
    %47 = vector.extract_strided_slice %28 {offsets = [0, 3], sizes = [64, 1], strides = [1, 1]} : vector<64x4xf32> to vector<64x1xf32>
    %c6 = arith.constant 6 : index
    %c0_13 = arith.constant 0 : index
    %48 = vector.load %arg2[%c6, %c0_13] : memref<8x20xf32, #tpu.memory_space<vmem>>, vector<1x20xf32>
    %49 = vector.broadcast %47 : vector<64x1xf32> to vector<64x20xf32>
    %50 = vector.broadcast %48 : vector<1x20xf32> to vector<64x20xf32>
    %51 = arith.mulf %49, %50 : vector<64x20xf32>
    %52 = arith.addf %46, %51 : vector<64x20xf32>
    %53 = vector.broadcast %29 : vector<1x20xf32> to vector<64x20xf32>
    %54 = arith.addf %52, %53 : vector<64x20xf32>
    %c0_14 = arith.constant 0 : index
    %c0_15 = arith.constant 0 : index
    %55 = vector.load %arg4[%c0_14, %c0_15] : memref<64x20xf32, #tpu.memory_space<vmem>>, vector<64x20xf32>
    tpu.vector_store %arg4[%c0_14, %c0_15], %54 {strides = array<i32>} : memref<64x20xf32, #tpu.memory_space<vmem>>, vector<64x20xf32>,
    %c0_16 = arith.constant 0 : index
    %c0_17 = arith.constant 0 : index
    %56 = tpu.strided_load %arg4[%c0_16, %c0_17] {strides = array<i32: 2, 1>} : memref<64x20xf32, #tpu.memory_space<vmem>>, vector<32x20xf32>
    %c1_18 = arith.constant 1 : index
    %c0_19 = arith.constant 0 : index
    %57 = tpu.strided_load %arg4[%c1_18, %c0_19] {strides = array<i32: 2, 1>} : memref<64x20xf32, #tpu.memory_space<vmem>>, vector<32x20xf32>
    %58 = arith.maximumf %56, %57 : vector<32x20xf32>
    %59 = tpu.transpose %58, [1, 0] : vector<32x20xf32> -> vector<20x32xf32>
    %c0_20 = arith.constant 0 : index
    %c0_21 = arith.constant 0 : index
    %c0_22 = arith.constant 0 : index
    %60 = vector.load %arg3[%c0_20, %c0_21, %c0_22] : memref<1x20x32xf32, #tpu.memory_space<vmem>>, vector<1x20x32xf32>
    %61 = vector.shape_cast %60 : vector<1x20x32xf32> to vector<20x32xf32>
    %62 = vector.shape_cast %59 : vector<20x32xf32> to vector<1x20x32xf32>
    tpu.vector_store %arg3[%c0_20, %c0_21, %c0_22], %62 {strides = array<i32>} : memref<1x20x32xf32, #tpu.memory_space<vmem>>, vector<1x20x32xf32>,
    return
  }
  func.func @transform_0(%arg0: i32) -> (i32, i32, i32) {
    %c0_i32 = arith.constant 0 : i32
    %c0_i32_0 = arith.constant 0 : i32
    %c0_i32_1 = arith.constant 0 : i32
    return %arg0, %c0_i32, %c0_i32_0 : i32, i32, i32
  }
  func.func @transform_1(%arg0: i32) -> (i32, i32) {
    %c0_i32 = arith.constant 0 : i32
    %c0_i32_0 = arith.constant 0 : i32
    %c0_i32_1 = arith.constant 0 : i32
    return %c0_i32, %c0_i32_0 : i32, i32
  }
  func.func @transform_2(%arg0: i32) -> (i32, i32, i32) {
    %c0_i32 = arith.constant 0 : i32
    %c0_i32_0 = arith.constant 0 : i32
    %c0_i32_1 = arith.constant 0 : i32
    return %arg0, %c0_i32, %c0_i32_0 : i32, i32, i32
  }
}

</mosaic_0001>

<bundles_post_ra>
// kernel: pogadw_forward.1
= control target key start
LH: loop header
LB: loop body
LE: loop exit
PB: predicated region body
PF: predicated region fallthrough
CT: control target
= control target key end

     0   :  { %s767_s9 = smov 0   ;;  %s1020_s0 = inlined_call_operand.vmem [shape: f32[2,4,64], index: 0, kind: input, shape index: {}]   ;;  %s1021_s1 = inlined_call_operand.vmem [shape: f32[8,20], index: 1, kind: input, shape index: {}]   ;;  %s1022_s2 = inlined_call_operand.vmem [shape: f32[2,20,32], index: 2, kind: output, shape index: {}]  }
   0x1 LB: > { %s681_s10 = sadd.s32 4294967295, %s746_s9   ;;  %p685_p0 = scmp.ge.s32.totalorder %s746_s9, 1  ;;  %s746_s9 = sphi %s767_s9, %s12_s9  }
   0x2   : > { %p111_p1 = scmp.lt.s32.totalorder %s746_s9, 3 }
   0x4   : > { %p112_p2 = pnand %p685_p0, %p111_p1 }
   0x5   : > { %p132_p3 = scmp.lt.s32.totalorder (!%p112_p2), %s681_s10, 1 }
   0x6   : > { %115 = sbr.rel (%p112_p2) target bundleno = 543 (0x21f), region = 28 }
   0xb   : > { %s1024_s10 = smov (!%p132_p3, %s681_s10), 1  ;;  %v748_v1 = vmov 0   ;;  %v749_v2 = vmov 2   ;;  %v174_v3 = vlaneseq  ;;  %v794_v8 = vld [vmem:[%s1021_s1] ss:$0 sm:$0xff]  ;;  %v750_v25 = vmov 1  }
   0xc   : > { %s686_s11 = sshll.u32 %s1024_s10, 2  ;;  %712 = vset.pattern.permute.xlu1 %v748_v1  ;;  %v805_v13 = vld [vmem:[%s1021_s1 + $0x1] ss:$0 sm:$0xff]  ;;  %v815_v17 = vld [vmem:[%s1021_s1 + $0x2] ss:$0 sm:$0xff]  ;;  %v751_v52 = vmov 3  }
   0xd   : > { %s135_s14 = scalar_lea.vmem %s1020_s0, %s686_s11  ;;  %v785_v5 = vshrl.u32 %v174_v3, 7  ;;  %vm561_vm4 = vcmask 162816   ;;  %s698_s3 = smul.u32 24, %s1024_s10  ;;  %vm621_vm5 = vcmask 261120   ;;  %vm624_vm6 = vcmask 257024  }
   0xe   : > { %v141_v0 = vld [vmem:[%s135_s14] sm:$0xf] }
   0xf   : > { %142 = vxpose.xlu0.b32.start.end [1/1] (short) (narrow) %v141_v0, 64  ;;  %vm200_vm0 = vcmp.lt.s32.totalorder %v785_v5, 1  ;;  %vm283_vm1 = vcmp.lt.s32.totalorder %v785_v5, 7  ;;  %vm184_vm2 = vcmp.ge.s32.totalorder %v785_v5, 1  ;;  %s140_s6 = scalar_lea.vmem %s1022_s2, %s698_s3 }
  0x38   : > { %729 = vset.pattern.permute.xlu0 %v749_v2 }
  0x8b   : > { %v783_v4 = vpop.trf.xlu0 }
  0x8c   : > { %v192_v7 = vrot.slane %v783_v4, 7  ;;  %v275_v63 = vrot.slane %v783_v4, 1  ;;  %v250_v3 = vmul.f32 %v805_v13, %v783_v4 }
  0x8f   : > { %v788_v6 = vpop.trf.xlu0 }
  0x90   : > { %v193_v9 = vrot.slane %v788_v6, 7  ;;  %v276_v14 = vrot.slane %v788_v6, 1  ;;  %v251_v16 = vmul.f32 %v805_v13, %v788_v6 }
  0x92   : > { %v207_v10 = vsel %vm200_vm0, %v192_v7, %v193_v9 }
  0x93   : > { %v238_v11 = vmul.f32 %v794_v8, %v207_v10  ;;  %v800_v12 = vpop.trf.xlu0 }
  0x94   : > { %v277_v15 = vrot.slane %v800_v12, 1  ;;  %v194_v27 = vrot.slane %v800_v12, 7  ;;  %v252_v49 = vmul.f32 %v805_v13, %v800_v12 }
  0x95   : > { %v259_v19 = vadd.f32 %v251_v16, %v238_v11 }
  0x96   : > { %v289_v18 = vsel %vm283_vm1, %v276_v14, %v277_v15  ;;  %v206_v35 = vsel %vm200_vm0, %v193_v9, %v194_v27  ;;  %v182_v9 = vadd.s32 56, %v785_v5 }
  0x97   : > { %v321_v20 = vmul.f32 %v815_v17, %v289_v18  ;;  %v822_v21 = vpop.trf.xlu0  ;;  %v239_v43 = vmul.f32 %v794_v8, %v206_v35 }
  0x98   : > { %v278_v30 = vrot.slane %v822_v21, 1  ;;  %v195_v61 = vrot.slane %v822_v21, 7  ;;  %vm274_vm3 = vcmp.lt.s32.totalorder %v182_v9, 63 }
  0x99   : > { %v329_v22 = vadd.f32 %v321_v20, %v259_v19  ;;  %v260_v56 = vadd.f32 %v252_v49, %v239_v43  ;;  %v967_v43 = vld [vmem:[%s1021_s1 + $0x7] ss:$0 sm:$0xff] }
  0x9a   : > { %v288_v40 = vsel %vm283_vm1, %v277_v15, %v278_v30  ;;  %v205_v19 = vsel %vm200_vm0, %v194_v27, %v195_v61 }
  0x9b   : > { %345 = vperm.xlu1 %712, %v329_v22   ;;  %v824_v23 = vpop.trf.xlu0  ;;  %v322_v50 = vmul.f32 %v815_v17, %v288_v40  ;;  %v240_v27 = vmul.f32 %v794_v8, %v205_v19 }
  0x9c   : > { %v196_v24 = vrot.slane %v824_v23, 7  ;;  %v254_v11 = vmul.f32 %v805_v13, %v824_v23  ;;  %v279_v15 = vrot.slane %v824_v23, 1 }
  0x9d   : > { %v330_v59 = vadd.f32 %v322_v50, %v260_v56 }
  0x9e   : > { %v204_v0 = vsel %vm200_vm0, %v195_v61, %v196_v24  ;;  %v287_v12 = vsel %vm283_vm1, %v278_v30, %v279_v15 }
  0x9f   : > { %713 = vset.pattern.permute.xlu1 %v750_v25  ;;  %v828_v26 = vpop.trf.xlu0  ;;  %v241_v10 = vmul.f32 %v794_v8, %v204_v0 }
  0xa0   : > { %v197_v28 = vrot.slane %v828_v26, 7  ;;  %396 = vperm.xlu1 %713, %v329_v22   ;;  %v255_v29 = vmul.f32 %v805_v13, %v828_v26  ;;  %v280_v32 = vrot.slane %v828_v26, 1 }
  0xa1   : > { %v262_v20 = vadd.f32 %v254_v11, %v241_v10 }
  0xa2   : > { %v203_v31 = vsel %vm200_vm0, %v196_v24, %v197_v28 }
  0xa3   : > { %v242_v33 = vmul.f32 %v794_v8, %v203_v31  ;;  %v164_v34 = vpop.trf.xlu0  ;;  %v323_v31 = vmul.f32 %v815_v17, %v287_v12 }
  0xa4   : > { %v198_v36 = vrot.slane %v164_v34, 7  ;;  %v281_v37 = vrot.slane %v164_v34, 1  ;;  %714 = vset.pattern.permute.xlu1 %v749_v2  ;;  %v256_v39 = vmul.f32 %v805_v13, %v164_v34 }
  0xa5   : > { %v263_v38 = vadd.f32 %v255_v29, %v242_v33  ;;  %449 = vperm.xlu1 %714, %v329_v22   ;;  %v253_v29 = vmul.f32 %v805_v13, %v822_v21 }
  0xa6   : > { %v202_v41 = vsel %vm200_vm0, %v197_v28, %v198_v36  ;;  %v285_v42 = vsel %vm283_vm1, %v280_v32, %v281_v37 }
  0xa7   : > { %v243_v44 = vmul.f32 %v794_v8, %v202_v41  ;;  %v325_v45 = vmul.f32 %v815_v17, %v285_v42  ;;  %v165_v46 = vpop.trf.xlu0  ;;  %v261_v5 = vadd.f32 %v253_v29, %v240_v27 }
  0xa8   : > { %v199_v47 = vrot.slane %v165_v46, 7  ;;  %v282_v48 = vrot.slane %v165_v46, 1  ;;  %v257_v26 = vmul.f32 %v805_v13, %v165_v46  ;;  %v943_v13 = vld [vmem:[%s1021_s1 + $0x4] ss:$0 sm:$0xff] }
  0xa9   : > { %v264_v51 = vadd.f32 %v256_v39, %v243_v44  ;;  %715 = vset.pattern.permute.xlu1 %v751_v52  ;;  %v860_v53 = vadd.f32 %v325_v45, %v263_v38  ;;  %v331_v30 = vadd.f32 %v323_v31, %v261_v5  ;;  %v961_v38 = vld [vmem:[%s1021_s1 + $0x6] ss:$0 sm:$0xff] }
  0xaa   : > { %v208_v54 = vsel %vm200_vm0, %v199_v47, %v192_v7  ;;  %v284_v55 = vsel %vm283_vm1, %v281_v37, %v282_v48  ;;  %502 = vperm.xlu1 %715, %v329_v22   ;;  %v290_v7 = vsel %vm283_vm1, %v275_v63, %v276_v14  ;;  %v286_v14 = vsel %vm283_vm1, %v279_v15, %v280_v32 }
  0xab   : > { %v326_v57 = vmul.f32 %v815_v17, %v284_v55  ;;  %465 = vperm.xlu0 %729, %v860_v53   ;;  %v225_v58 = vsel %vm184_vm2, %v208_v54, 0.0  ;;  %v320_v6 = vmul.f32 %v815_v17, %v290_v7  ;;  %v201_v16 = vsel %vm200_vm0, %v198_v36, %v199_v47 }
  0xac   : > { %v237_v62 = vmul.f32 %v794_v8, %v225_v58  ;;  %v291_v18 = vsel %vm283_vm1, %v282_v48, %v275_v63  ;;  %v324_v23 = vmul.f32 %v815_v17, %v286_v14  ;;  %v244_v24 = vmul.f32 %v794_v8, %v201_v16 }
  0xad   : > { %v869_v60 = vadd.f32 %v326_v57, %v264_v51  ;;  %v315_v28 = vsel %vm274_vm3, %v291_v18, 0.0 }
  0xae   : > { %716 = vset.pattern.permute.xlu1 %v748_v1  ;;  %v258_v4 = vadd.f32 %v250_v3, %v237_v62  ;;  %v265_v32 = vadd.f32 %v257_v26, %v244_v24  ;;  %v332_v33 = vadd.f32 %v324_v23, %v262_v20  ;;  %v327_v34 = vmul.f32 %v815_v17, %v315_v28  ;;  %v948_v17 = vld [vmem:[%s1021_s1 + $0x3] ss:$0 sm:$0xff] }
  0xaf   : > { %350 = vperm.xlu1 %716, %v330_v59   ;;  %731 = vset.pattern.permute.xlu0 %v750_v25 }
  0xb0   : > { %416 = vperm.xlu0 %731, %v869_v60   ;;  %v328_v22 = vadd.f32 %v320_v6, %v258_v4  ;;  %v335_v35 = vadd.f32 %v327_v34, %v265_v32 }
  0xb3   : > { %717 = vset.pattern.permute.xlu1 %v750_v25 }
  0xb4   : > { %400 = vperm.xlu1 %717, %v330_v59   ;;  %732 = vset.pattern.permute.xlu0 %v749_v2 }
  0xb5   : > { %469 = vperm.xlu0 %732, %v869_v60  }
  0xb8   : > { %718 = vset.pattern.permute.xlu1 %v749_v2 }
  0xb9   : > { %453 = vperm.xlu1 %718, %v330_v59   ;;  %735 = vset.pattern.permute.xlu0 %v748_v1 }
  0xba   : > { %340 = vperm.xlu0 %735, %v328_v22  }
  0xbd   : > { %719 = vset.pattern.permute.xlu1 %v751_v52 }
  0xbe   : > { %506 = vperm.xlu1 %719, %v330_v59   ;;  %736 = vset.pattern.permute.xlu0 %v751_v52 }
  0xbf   : > { %514 = vperm.xlu0 %736, %v332_v33  }
  0xc2   : > { %720 = vset.pattern.permute.xlu1 %v748_v1 }
  0xc3   : > { %355 = vperm.xlu1 %720, %v331_v30   ;;  %526 = vperm.xlu0 %736, %v335_v35  }
  0xc7   : > { %721 = vset.pattern.permute.xlu1 %v750_v25 }
  0xc8   : > { %404 = vperm.xlu1 %721, %v331_v30  }
  0xcc   : > { %722 = vset.pattern.permute.xlu1 %v749_v2 }
  0xcd   : > { %457 = vperm.xlu1 %722, %v331_v30  }
  0xd1   : > { %723 = vset.pattern.permute.xlu1 %v751_v52 }
  0xd2   : > { %510 = vperm.xlu1 %723, %v331_v30  }
  0xd6   : > { %724 = vset.pattern.permute.xlu1 %v748_v1 }
  0xd7   : > { %360 = vperm.xlu1 %724, %v332_v33  }
  0xdb   : > { %725 = vset.pattern.permute.xlu1 %v750_v25 }
  0xdc   : > { %408 = vperm.xlu1 %725, %v332_v33  }
  0xe0   : > { %726 = vset.pattern.permute.xlu1 %v749_v2 }
  0xe1   : > { %461 = vperm.xlu1 %726, %v332_v33  }
  0xe5   : > { %727 = vset.pattern.permute.xlu1 %v748_v1 }
  0xe6   : > { %365 = vperm.xlu1 %727, %v860_v53  }
  0xea   : > { %728 = vset.pattern.permute.xlu1 %v750_v25 }
  0xeb   : > { %412 = vperm.xlu1 %728, %v860_v53  }
  0xef   : > { %730 = vset.pattern.permute.xlu1 %v748_v1 }
  0xf0   : > { %370 = vperm.xlu1 %730, %v869_v60  }
  0xf4   : > { %375 = vperm.xlu1 %730, %v335_v35  }
  0xf8   : > { %733 = vset.pattern.permute.xlu1 %v750_v25 }
  0xf9   : > { %420 = vperm.xlu1 %733, %v335_v35  }
  0xfd   : > { %734 = vset.pattern.permute.xlu1 %v749_v2 }
  0xfe   : > { %473 = vperm.xlu1 %734, %v335_v35  }
 0x102   : > { %737 = vset.pattern.permute.xlu1 %v750_v25 }
 0x103   : > { %392 = vperm.xlu1 %737, %v328_v22  }
 0x107   : > { %738 = vset.pattern.permute.xlu1 %v749_v2  ;;  %v953_v2 = vld [vmem:[%s1021_s1 + $0x5] ss:$0 sm:$0xff] }
 0x108   : > { %445 = vperm.xlu1 %738, %v328_v22  }
 0x10c   : > { %739 = vset.pattern.permute.xlu1 %v751_v52 }
 0x10d   : > { %498 = vperm.xlu1 %739, %v328_v22  }
 0x111   : > { %518 = vperm.xlu1 %739, %v860_v53  }
 0x115   : > { %522 = vperm.xlu1 %739, %v869_v60  }
 0x116   : > { %v346_v1 = vpop.permute.xlu1 %345 }
 0x117   : > { %v383_v36 = vmul.f32 %v948_v17, %v346_v1 }
 0x11b   : > { %v397_v8 = vpop.permute.xlu1 %396 }
 0x11c   : > { %v428_v21 = vmul.f32 %v943_v13, %v397_v8 }
 0x11e   : > { %v436_v39 = vadd.f32 %v428_v21, %v383_v36 }
 0x120   : > { %v450_v25 = vpop.permute.xlu1 %449 }
 0x121   : > { %v481_v37 = vmul.f32 %v953_v2, %v450_v25 }
 0x123   : > { %v489_v41 = vadd.f32 %v481_v37, %v436_v39 }
 0x125   : > { %v503_v40 = vpop.permute.xlu1 %502 }
 0x126   : > { %v534_v42 = vmul.f32 %v961_v38, %v503_v40  ;;  %v466_v60 = vpop.permute.xlu0 %465 }
 0x128   : > { %v542_v44 = vadd.f32 %v534_v42, %v489_v41 }
 0x12a   : > { %v554_v45 = vadd.f32 %v967_v43, %v542_v44  ;;  %v351_v46 = vpop.permute.xlu1 %350 }
 0x12b   : > { %v384_v50 = vmul.f32 %v948_v17, %v351_v46  ;;  %v417_v63 = vpop.permute.xlu0 %416 }
 0x12c   : > { %563 = vst.msk [vmem:[#allocation2 + $0x8] sm:$0xff] %vm561_vm4, %v554_v45 }
 0x12f   : > { %v401_v47 = vpop.permute.xlu1 %400 }
 0x130   : > { %v429_v48 = vmul.f32 %v943_v13, %v401_v47  ;;  %v470_v15 = vpop.permute.xlu0 %469 }
 0x132   : > { %v437_v52 = vadd.f32 %v429_v48, %v384_v50 }
 0x134   : > { %v454_v49 = vpop.permute.xlu1 %453 }
 0x135   : > { %v482_v51 = vmul.f32 %v953_v2, %v454_v49  ;;  %v341_v16 = vpop.permute.xlu0 %340 }
 0x136   : > { %v382_v45 = vmul.f32 %v948_v17, %v341_v16 }
 0x137   : > { %v490_v54 = vadd.f32 %v482_v51, %v437_v52 }
 0x139   : > { %v507_v53 = vpop.permute.xlu1 %506 }
 0x13a   : > { %v535_v55 = vmul.f32 %v961_v38, %v507_v53  ;;  %v515_v22 = vpop.permute.xlu0 %514 }
 0x13b   : > { %v537_v12 = vmul.f32 %v961_v38, %v515_v22 }
 0x13c   : > { %v543_v56 = vadd.f32 %v535_v55, %v490_v54  ;;  %v485_v55 = vmul.f32 %v953_v2, %v466_v60 }
 0x13e   : > { %v555_v57 = vadd.f32 %v967_v43, %v543_v56  ;;  %v356_v58 = vpop.permute.xlu1 %355  ;;  %v527_v1 = vpop.permute.xlu0 %526  ;;  %v433_v56 = vmul.f32 %v943_v13, %v417_v63 }
 0x13f   : > { %v385_v0 = vmul.f32 %v948_v17, %v356_v58  ;;  %v540_v36 = vmul.f32 %v961_v38, %v527_v1 }
 0x140   : > { %564 = vst.msk [vmem:[#allocation2 + $0x10] sm:$0xff] %vm561_vm4, %v555_v57 }
 0x143   : > { %v405_v59 = vpop.permute.xlu1 %404 }
 0x144   : > { %v430_v61 = vmul.f32 %v943_v13, %v405_v59 }
 0x146   : > { %v438_v7 = vadd.f32 %v430_v61, %v385_v0 }
 0x148   : > { %v458_v62 = vpop.permute.xlu1 %457 }
 0x149   : > { %v483_v3 = vmul.f32 %v953_v2, %v458_v62 }
 0x14b   : > { %v491_v10 = vadd.f32 %v483_v3, %v438_v7  ;;  %v486_v3 = vmul.f32 %v953_v2, %v470_v15 }
 0x14d   : > { %v511_v9 = vpop.permute.xlu1 %510 }
 0x14e   : > { %v536_v11 = vmul.f32 %v961_v38, %v511_v9 }
 0x150   : > { %v544_v4 = vadd.f32 %v536_v11, %v491_v10 }
 0x152   : > { %v556_v6 = vadd.f32 %v967_v43, %v544_v4  ;;  %v361_v14 = vpop.permute.xlu1 %360 }
 0x153   : > { %v386_v20 = vmul.f32 %v948_v17, %v361_v14 }
 0x154   : > { %565 = vst.msk [vmem:[#allocation2 + $0x18] sm:$0xff] %vm561_vm4, %v556_v6 }
 0x157   : > { %v409_v18 = vpop.permute.xlu1 %408 }
 0x158   : > { %v431_v19 = vmul.f32 %v943_v13, %v409_v18 }
 0x15a   : > { %v439_v24 = vadd.f32 %v431_v19, %v386_v20 }
 0x15b   : > { %v572_v15 = vld [vmem:[#allocation2 + $0x10] ss:$2 sm:$0xff]  ;;  %v580_v6 = vld [vmem:[#allocation2 + $0x11] ss:$2 sm:$0xff] }
 0x15c   : > { %v462_v23 = vpop.permute.xlu1 %461  ;;  %v586_v14 = vmax.f32 %v572_v15, %v580_v6 }
 0x15d   : > { %v484_v26 = vmul.f32 %v953_v2, %v462_v23 }
 0x15f   : > { %v492_v28 = vadd.f32 %v484_v26, %v439_v24 }
 0x161   : > { %v545_v27 = vadd.f32 %v537_v12, %v492_v28  ;;  %v366_v29 = vpop.permute.xlu1 %365 }
 0x162   : > { %v387_v48 = vmul.f32 %v948_v17, %v366_v29 }
 0x163   : > { %v557_v31 = vadd.f32 %v967_v43, %v545_v27 }
 0x165   : > { %566 = vst.msk [vmem:[#allocation2 + $0x20] sm:$0xff] %vm561_vm4, %v557_v31 }
 0x166   : > { %v413_v32 = vpop.permute.xlu1 %412 }
 0x167   : > { %v432_v46 = vmul.f32 %v943_v13, %v413_v32 }
 0x169   : > { %v440_v51 = vadd.f32 %v432_v46, %v387_v48 }
 0x16b   : > { %v371_v33 = vpop.permute.xlu1 %370  ;;  %v493_v62 = vadd.f32 %v485_v55, %v440_v51 }
 0x16c   : > { %v388_v52 = vmul.f32 %v948_v17, %v371_v33 }
 0x16e   : > { %v441_v59 = vadd.f32 %v433_v56, %v388_v52 }
 0x16f   : > { %v376_v34 = vpop.permute.xlu1 %375 }
 0x170   : > { %v389_v35 = vmul.f32 %v948_v17, %v376_v34  ;;  %v494_v10 = vadd.f32 %v486_v3, %v441_v59 }
 0x174   : > { %v421_v5 = vpop.permute.xlu1 %420 }
 0x175   : > { %v434_v30 = vmul.f32 %v943_v13, %v421_v5 }
 0x177   : > { %v442_v21 = vadd.f32 %v434_v30, %v389_v35 }
 0x179   : > { %v474_v8 = vpop.permute.xlu1 %473 }
 0x17a   : > { %v487_v25 = vmul.f32 %v953_v2, %v474_v8 }
 0x17c   : > { %v495_v37 = vadd.f32 %v487_v25, %v442_v21 }
 0x17e   : > { %v548_v39 = vadd.f32 %v540_v36, %v495_v37  ;;  %v393_v40 = vpop.permute.xlu1 %392 }
 0x17f   : > { %v427_v42 = vmul.f32 %v943_v13, %v393_v40 }
 0x180   : > { %v560_v41 = vadd.f32 %v967_v43, %v548_v39 }
 0x181   : > { %v435_v49 = vadd.f32 %v427_v42, %v382_v45 }
 0x182   : > { %569 = vst.msk [vmem:[#allocation2 + $0x38] sm:$0xff] %vm561_vm4, %v560_v41 }
 0x183   : > { %v446_v44 = vpop.permute.xlu1 %445 }
 0x184   : > { %v480_v47 = vmul.f32 %v953_v2, %v446_v44 }
 0x186   : > { %v488_v53 = vadd.f32 %v480_v47, %v435_v49 }
 0x188   : > { %v499_v50 = vpop.permute.xlu1 %498 }
 0x189   : > { %v533_v54 = vmul.f32 %v961_v38, %v499_v50 }
 0x18b   : > { %v541_v57 = vadd.f32 %v533_v54, %v488_v53 }
 0x18c   : > { %v519_v58 = vpop.permute.xlu1 %518 }
 0x18d   : > { %v553_v61 = vadd.f32 %v967_v43, %v541_v57  ;;  %v538_v0 = vmul.f32 %v961_v38, %v519_v58 }
 0x18f   : > { %562 = vst.msk [vmem:[#allocation2] sm:$0xff] %vm561_vm4, %v553_v61  ;;  %v546_v17 = vadd.f32 %v538_v0, %v493_v62 }
 0x190   : > { %v523_v7 = vpop.permute.xlu1 %522 }
 0x191   : > { %v558_v9 = vadd.f32 %v967_v43, %v546_v17  ;;  %v539_v60 = vmul.f32 %v961_v38, %v523_v7 }
 0x193   : > { %567 = vst.msk [vmem:[#allocation2 + $0x28] sm:$0xff] %vm561_vm4, %v558_v9  ;;  %v547_v13 = vadd.f32 %v539_v60, %v494_v10 }
 0x195   : > { %v559_v63 = vadd.f32 %v967_v43, %v547_v13 }
 0x196   : > { %v570_v11 = vld [vmem:[#allocation2] ss:$2 sm:$0xff]  ;;  %v578_v4 = vld [vmem:[#allocation2 + $0x1] ss:$2 sm:$0xff] }
 0x197   : > { %568 = vst.msk [vmem:[#allocation2 + $0x30] sm:$0xff] %vm561_vm4, %v559_v63  ;;  %v585_v2 = vmax.f32 %v570_v11, %v578_v4 }
 0x199   : > { %589 = vxpose.xlu1.b32.start [1/4] (short) (narrow) %v585_v2, 24 }
 0x19a   : > { %v574_v16 = vld [vmem:[#allocation2 + $0x20] ss:$2 sm:$0xff]  ;;  %v582_v18 = vld [vmem:[#allocation2 + $0x21] ss:$2 sm:$0xff] }
 0x19b   : > { %v587_v19 = vmax.f32 %v574_v16, %v582_v18 }
 0x19d   : > { %590 = vxpose.xlu1.b32.cont [2/4] (short) (narrow) %v586_v14, 24 }
 0x19e   : > { %v576_v38 = vld [vmem:[#allocation2 + $0x30] ss:$2 sm:$0xff]  ;;  %v584_v20 = vld [vmem:[#allocation2 + $0x31] ss:$2 sm:$0xff] }
 0x19f   : > { %v588_v22 = vmax.f32 %v576_v38, %v584_v20 }
 0x1a1   : > { %591 = vxpose.xlu1.b32.cont [3/4] (short) (narrow) %v587_v19, 24 }
 0x1a5   : > { %592 = vxpose.xlu1.b32.end [4/4] (short) (narrow) %v588_v22, 24 }
 0x215   : > { %v605_v43 = vpop.trf.xlu1 }
 0x216   : > { %622 = vst.msk [vmem:[%s140_s6] sm:$0xff] %vm621_vm5, %v605_v43 }
 0x219   : > { %v606_v23 = vpop.trf.xlu1 }
 0x21a   : > { %623 = vst.msk [vmem:[%s140_s6 + $0x8] sm:$0xff] %vm621_vm5, %v606_v23 }
 0x21d   : > { %v607_v24 = vpop.trf.xlu1 }
 0x21e   : > { %625 = vst.msk [vmem:[%s140_s6 + $0x10] sm:$0xf] %vm624_vm6, %v607_v24 }
 0x21f PF: > { %s12_s9 = sadd.s32 1, %s746_s9  }
 0x220   : > { %p9_p4 = scmp.ge.s32.totalorder %s12_s9, 4  }
 0x222   :  { %11 = sbr.rel (!%p9_p4) target bundleno = 1 (0x1), region = 65 }

</bundles_post_ra>
